<compile_context>
chip_gen: v6e
topology: v6e:2x2x1
jax: 0.10.0
libtpu: 0.0.40
codegen_flags: <defaults>
</compile_context>

<pallas_src>
import functools

import jax
import jax.numpy as jnp
from jax import lax
from jax.experimental import pallas as pl
from jax.experimental.pallas import tpu as pltpu

PREDICTOR = "predictor"
GENERATOR = "generator"

_LANES = 128
_ACC_ROWS = 8            # one f32 vreg worth of sublanes
_VMEM_LIMIT = 32 * 1024 * 1024   # fits every generation (v7x physical = 64 MiB/TC)


def _cdiv(a: int, b: int) -> int:
    return -(-a // b)


def _round_up(x: int, m: int) -> int:
    return (x + m - 1) // m * m


def _device_kind() -> str:
    try:
        return jax.devices()[0].device_kind.lower()
    except Exception:  # pragma: no cover - defensive; fall back to generic config
        return ""


def _wsse_kernel(pred_ref, targ_ref, out_ref, acc_ref, *,
                 alpha, steps, tile_rows, valid_rows, needs_mask):
    """Accumulate the weighted sum-of-squared-errors for one shard of rows."""
    shard = pl.program_id(0)
    step = pl.program_id(1)

    @pl.when(step == 0)
    def _():
        acc_ref[...] = jnp.zeros_like(acc_ref)

    # Inputs are DMA'd in their native dtype; cast to f32 in-kernel (VPU).
    t = targ_ref[...].astype(jnp.float32)
    p = pred_ref[...].astype(jnp.float32)
    d = t - p
    term = d * d * (1.0 + alpha * t)

    if needs_mask:
        # Mask rows beyond the real row count: covers the partial last block
        # and any clamped (duplicate) blocks from shard/step over-provisioning.
        base = (shard * steps + step) * tile_rows
        row = base + lax.broadcasted_iota(jnp.int32, term.shape, 0)
        term = jnp.where(row < valid_rows, term, 0.0)

    # Fold the (tile_rows, 128) tile into one (8, 128) vreg with a pure-VALU
    # vreg-add tree; the only VMEM read-modify-write per step is a single vreg.
    acc_ref[...] += jnp.sum(term.reshape(tile_rows // _ACC_ROWS, _ACC_ROWS, _LANES),
                            axis=0)

    @pl.when(step == pl.num_programs(1) - 1)
    def _():
        # Single cross-lane/sublane reduction per shard; broadcast the partial
        # sum into a lane-dense (1, 8, 128) output block.
        out_ref[...] = jnp.zeros_like(out_ref) + jnp.sum(acc_ref[...])


def adversarial_gol_loss(prediction, target, model_type: str, alpha: float = 9.0):
    """Pallas implementation of AdversarialGoLLoss.forward."""
    if model_type == PREDICTOR:
        sign = 1.0
    elif model_type == GENERATOR:
        sign = -1.0
    else:
        raise ValueError(f"Invalid model type: {model_type}")

    assert prediction.shape == target.shape
    n_elems = prediction.size

    kind = _device_kind()
    is_v7 = "v7" in kind
    is_v5 = "v5" in kind
    # ~4 MiB f32 per input block (2 inputs x 2 buffers = 16 MiB) on v6e/v7x;
    # ~2 MiB per block (8 MiB total) on v5e's smaller scoped-VMEM default.
    max_tile_rows = 4096 if is_v5 else 8192
    num_shards = 2 if is_v7 else 1   # 2 TensorCores per chip only on v7x

    p_item = jnp.dtype(prediction.dtype).itemsize
    t_item = jnp.dtype(target.dtype).itemsize
    # Sub-32-bit dtypes pack along sublanes: min row multiple 8 (f32), 16 (bf16),
    # 32 (int8/fp8).  Use the stricter of the two input dtypes.
    sublane_mult = 8 * max(1, 4 // min(p_item, t_item))

    rows = _cdiv(n_elems, _LANES)
    pad = rows * _LANES - n_elems

    def to_slab(x):
        flat = x.reshape(-1)  # metadata-only for contiguous arrays
        if pad:
            # TODO(synk): non-128-divisible element counts still take one HBM
            # copy here; GoL grids (B*C*H*W % 128 == 0) never hit this branch.
            flat = jnp.pad(flat, (0, pad))
        return flat.reshape(rows, _LANES)

    p2d = to_slab(prediction)
    t2d = to_slab(target)

    rows_per_shard = _cdiv(rows, num_shards)
    tile_rows = min(max_tile_rows, _round_up(rows_per_shard, sublane_mult))
    total_blocks = _cdiv(rows, tile_rows)
    num_shards = min(num_shards, total_blocks)
    steps = _cdiv(total_blocks, num_shards)

    needs_clamp = num_shards * steps > total_blocks       # over-provisioned blocks
    needs_mask = num_shards * steps * tile_rows != rows    # any fake rows at all

    if needs_clamp:
        def in_idx(c, i):
            # Duplicate (over-provisioned) steps re-read the last real block;
            # the in-kernel row mask zeroes their contribution.
            return (jnp.minimum(c * steps + i, total_blocks - 1), 0)
    else:
        def in_idx(c, i):
            return (c * steps + i, 0)

    kernel = functools.partial(
        _wsse_kernel,
        alpha=float(alpha),
        steps=steps,
        tile_rows=tile_rows,
        valid_rows=rows,
        needs_mask=needs_mask,
    )

    cost = pl.CostEstimate(
        flops=6 * n_elems,
        transcendentals=0,
        bytes_accessed=n_elems * (p_item + t_item)
        + num_shards * _ACC_ROWS * _LANES * 4,
    )

    partials = pl.pallas_call(
        kernel,
        out_shape=jax.ShapeDtypeStruct((num_shards, _ACC_ROWS, _LANES), jnp.float32),
        grid_spec=pltpu.PrefetchScalarGridSpec(
            num_scalar_prefetch=0,
            grid=(num_shards, steps),
            in_specs=[
                pl.BlockSpec((tile_rows, _LANES), in_idx),
                pl.BlockSpec((tile_rows, _LANES), in_idx),
            ],
            out_specs=pl.BlockSpec((1, _ACC_ROWS, _LANES), lambda c, i: (c, 0, 0)),
            scratch_shapes=[pltpu.VMEM((_ACC_ROWS, _LANES), jnp.float32)],
        ),
        compiler_params=pltpu.CompilerParams(
            # TODO(synk): verify with xprof that "parallel" shards across both
            # TensorCores on v7x; switch to pltpu.CORE_PARALLEL if it does not.
            dimension_semantics=("parallel", "arbitrary"),
            vmem_limit_bytes=_VMEM_LIMIT,
        ),
        cost_estimate=cost,
    )(p2d, t2d)

    # sign and 1/N applied outside the kernel: one compiled kernel serves both
    # PREDICTOR and GENERATOR (and any alpha-equal reuse).
    wsse = partials[:, 0, 0].sum()
    return wsse * (sign / float(n_elems))


def _reference(prediction, target, model_type, alpha=9.0):
    p = prediction.astype(jnp.float32)
    t = target.astype(jnp.float32)
    wmse = (t - p) ** 2 * (1.0 + alpha * t)
    loss = jnp.mean(wmse)
    return loss if model_type == PREDICTOR else -loss


if __name__ == "__main__":
    key = jax.random.PRNGKey(0)

    ok = True
    # Shape 1: NCHW Game-of-Life grids (2048 elems = 16 full lanes rows).
    # Shape 2: 20x20 spatial (3200 elems = 25 rows) exercises the in-kernel
    # row mask / partial-block path without any jnp.pad.
    for shape in ((2, 4, 16, 16), (2, 4, 20, 20)):
        k1, k2, key = jax.random.split(key, 3)
        prediction = jax.random.uniform(k1, shape, dtype=jnp.float32)
        target = jnp.round(jax.random.uniform(k2, shape, dtype=jnp.float32))

        for mtype in (PREDICTOR, GENERATOR):
            got = adversarial_gol_loss(prediction, target, mtype, alpha=9.0)
            got = jax.block_until_ready(got)
            want = _reference(prediction, target, mtype, alpha=9.0)
            if not jnp.allclose(got, want, rtol=1e-5, atol=1e-5):
                ok = False
                print(f"MISMATCH for shape={shape} {mtype}: got {got}, want {want}")

    if ok:
        print("KERNEL_OK")
</pallas_src>

<mosaic_0001>
module attributes {stable_mosaic.version = 11 : i64} {
  func.func @_wsse_kernel(%arg0: i32, %arg1: i32, %arg2: memref<16x128xf32, #tpu.memory_space<vmem>>, %arg3: memref<16x128xf32, #tpu.memory_space<vmem>>, %arg4: memref<1x8x128xf32, #tpu.memory_space<vmem>>, %arg5: memref<8x128xf32, #tpu.memory_space<vmem>>) attributes {dimension_semantics = [#tpu.dimension_semantics<parallel>, #tpu.dimension_semantics<arbitrary>], iteration_bounds = array<i64: 1, 1>, scalar_prefetch = 0 : i64, scratch_operands = 1 : i64, tpu.core_type = #tpu.core_type<tc>, window_params = [{transform_indices = @transform_0, window_bounds = array<i64: 16, 128>}, {transform_indices = @transform_1, window_bounds = array<i64: 16, 128>}, {transform_indices = @transform_2, window_bounds = array<i64: 1, 8, 128>}]} {
    %c0_i32 = arith.constant 0 : i32
    %0 = arith.cmpi eq, %arg1, %c0_i32 : i32
    %1 = arith.extui %0 : i1 to i32
    %c0_i32_0 = arith.constant 0 : i32
    %2 = arith.cmpi ne, %1, %c0_i32_0 : i32
    scf.if %2 {
      %cst_12 = arith.constant 0.000000e+00 : f32
      %20 = vector.broadcast %cst_12 : f32 to vector<8x128xf32>
      %c0_13 = arith.constant 0 : index
      %c0_14 = arith.constant 0 : index
      %21 = vector.load %arg5[%c0_13, %c0_14] : memref<8x128xf32, #tpu.memory_space<vmem>>, vector<8x128xf32>
      tpu.vector_store %arg5[%c0_13, %c0_14], %20 {strides = array<i32>} : memref<8x128xf32, #tpu.memory_space<vmem>>, vector<8x128xf32>,
    } else {
    }
    %c0 = arith.constant 0 : index
    %c0_1 = arith.constant 0 : index
    %3 = vector.load %arg3[%c0, %c0_1] : memref<16x128xf32, #tpu.memory_space<vmem>>, vector<16x128xf32>
    %c0_2 = arith.constant 0 : index
    %c0_3 = arith.constant 0 : index
    %4 = vector.load %arg2[%c0_2, %c0_3] : memref<16x128xf32, #tpu.memory_space<vmem>>, vector<16x128xf32>
    %5 = arith.subf %3, %4 : vector<16x128xf32>
    %6 = arith.mulf %5, %5 : vector<16x128xf32>
    %cst = arith.constant 9.000000e+00 : f32
    %7 = vector.broadcast %cst : f32 to vector<16x128xf32>
    %8 = arith.mulf %7, %3 : vector<16x128xf32>
    %cst_4 = arith.constant 1.000000e+00 : f32
    %9 = vector.broadcast %cst_4 : f32 to vector<16x128xf32>
    %10 = arith.addf %9, %8 : vector<16x128xf32>
    %11 = arith.mulf %6, %10 : vector<16x128xf32>
    %c0_5 = arith.constant 0 : index
    %c0_6 = arith.constant 0 : index
    %12 = vector.load %arg5[%c0_5, %c0_6] : memref<8x128xf32, #tpu.memory_space<vmem>>, vector<8x128xf32>
    %13 = vector.shape_cast %11 : vector<16x128xf32> to vector<2x8x128xf32>
    %cst_7 = arith.constant dense<0.000000e+00> : vector<8x128xf32>
    %14 = vector.multi_reduction <add>, %13, %cst_7 [0] : vector<2x8x128xf32> to vector<8x128xf32>
    %15 = arith.addf %12, %14 : vector<8x128xf32>
    %c0_8 = arith.constant 0 : index
    %c0_9 = arith.constant 0 : index
    %16 = vector.load %arg5[%c0_8, %c0_9] : memref<8x128xf32, #tpu.memory_space<vmem>>, vector<8x128xf32>
    tpu.vector_store %arg5[%c0_8, %c0_9], %15 {strides = array<i32>} : memref<8x128xf32, #tpu.memory_space<vmem>>, vector<8x128xf32>,
    %c0_i32_10 = arith.constant 0 : i32
    %17 = arith.cmpi eq, %arg1, %c0_i32_10 : i32
    %18 = arith.extui %17 : i1 to i32
    %c0_i32_11 = arith.constant 0 : i32
    %19 = arith.cmpi ne, %18, %c0_i32_11 : i32
    scf.if %19 {
      %cst_12 = arith.constant 0.000000e+00 : f32
      %20 = vector.broadcast %cst_12 : f32 to vector<1x8x128xf32>
      %c0_13 = arith.constant 0 : index
      %c0_14 = arith.constant 0 : index
      %21 = vector.load %arg5[%c0_13, %c0_14] : memref<8x128xf32, #tpu.memory_space<vmem>>, vector<8x128xf32>
      %22 = vector.shape_cast %21 : vector<8x128xf32> to vector<1x8x128xf32>
      %cst_15 = arith.constant dense<0.000000e+00> : vector<1xf32>
      %23 = vector.multi_reduction <add>, %22, %cst_15 [1, 2] : vector<1x8x128xf32> to vector<1xf32>
      %24 = vector.shape_cast %23 : vector<1xf32> to vector<1x1x1xf32>
      %25 = vector.extract %24[0, 0, 0] : f32 from vector<1x1x1xf32>
      %26 = vector.broadcast %25 : f32 to vector<1x8x128xf32>
      %27 = arith.addf %20, %26 : vector<1x8x128xf32>
      %c0_16 = arith.constant 0 : index
      %c0_17 = arith.constant 0 : index
      %c0_18 = arith.constant 0 : index
      %28 = vector.load %arg4[%c0_16, %c0_17, %c0_18] : memref<1x8x128xf32, #tpu.memory_space<vmem>>, vector<1x8x128xf32>
      tpu.vector_store %arg4[%c0_16, %c0_17, %c0_18], %27 {strides = array<i32>} : memref<1x8x128xf32, #tpu.memory_space<vmem>>, vector<1x8x128xf32>,
    } else {
    }
    return
  }
  func.func @transform_0(%arg0: i32, %arg1: i32) -> (i32, i32) {
    %c1_i32 = arith.constant 1 : i32
    %0 = arith.muli %arg0, %c1_i32 : i32
    %1 = arith.addi %0, %arg1 : i32
    %c0_i32 = arith.constant 0 : i32
    %c0_i32_0 = arith.constant 0 : i32
    return %1, %c0_i32 : i32, i32
  }
  func.func @transform_1(%arg0: i32, %arg1: i32) -> (i32, i32) {
    %c1_i32 = arith.constant 1 : i32
    %0 = arith.muli %arg0, %c1_i32 : i32
    %1 = arith.addi %0, %arg1 : i32
    %c0_i32 = arith.constant 0 : i32
    %c0_i32_0 = arith.constant 0 : i32
    return %1, %c0_i32 : i32, i32
  }
  func.func @transform_2(%arg0: i32, %arg1: i32) -> (i32, i32, i32) {
    %c0_i32 = arith.constant 0 : i32
    %c0_i32_0 = arith.constant 0 : i32
    %c0_i32_1 = arith.constant 0 : i32
    return %arg0, %c0_i32, %c0_i32_0 : i32, i32, i32
  }
}

</mosaic_0001>

<bundles_post_ra>
// kernel: tpu_custom_call.1
= control target key start
LH: loop header
LB: loop body
LE: loop exit
PB: predicated region body
PF: predicated region fallthrough
CT: control target
= control target key end

     0   :  { %7 = vsyncpa [#allocation4], 0  ;;  %s209_s0 = inlined_call_operand.hbm [shape: f32[16,128], index: 0, kind: input, shape index: {}]   ;;  %s210_s1 = inlined_call_operand.hbm [shape: f32[16,128], index: 1, kind: input, shape index: {}]   ;;  %s211_s2 = inlined_call_operand.hbm [shape: f32[1,8,128], index: 2, kind: output, shape index: {}]  }
   0x1   :  { %8 = vsyncpa [#allocation7], 0 }
   0x2   :  { %9 = vsyncpa [#allocation5], 0  ;;  %s180_s9 = smov [#allocation3]  }
   0x3   :  { %s19_s10 = sshll.u32 %s180_s9, 4  ;;  %s20_s10 = int_to_ptr.vmem [resolvable:$true] %s19_s10 }
   0x4   :  { %s122_s11 = scalar_lea.vmem %s20_s10, 256  ;;  %p127_p1 = scmp.lt.s32.totalorder %s20_s10, %s20_s10 }
   0x5   :  { %p123_p0 = scmp.ne.s32.totalorder %s20_s10, %s122_s11  ;;  %p128_p2 = scmp.lt.s32.totalorder %s122_s11, %s122_s11 }
   0x7   :  { %p129_p3 = por %p128_p2, %p127_p1 }
   0x9   :  { %p130_p4 = pnand %p129_p3, %p123_p0 }
   0xb   :  { %133 = shalt.err (!%p130_p4)
}
   0xc   :  { %s181_s12 = smov 128   ;;  %s182_s13 = smov 8  }
   0xd   :  { %25 = dma.hbm_to_vmem [thread:$0]  %s209_s0, 256, %s20_s10, [#allocation4], %s181_s12, %s181_s12, %s182_s13  }
   0xe   :  { %s183_s16 = smov [#allocation6]  }
   0xf   :  { %s35_s17 = sshll.u32 %s183_s16, 4  ;;  %s36_s17 = int_to_ptr.vmem [resolvable:$true] %s35_s17 }
  0x10   :  { %s142_s18 = scalar_lea.vmem %s36_s17, 256  ;;  %p147_p6 = scmp.lt.s32.totalorder %s36_s17, %s36_s17 }
  0x11   :  { %p143_p5 = scmp.ne.s32.totalorder %s36_s17, %s142_s18  ;;  %p148_p7 = scmp.lt.s32.totalorder %s142_s18, %s142_s18 }
  0x13   :  { %p149_p8 = por %p148_p7, %p147_p6 }
  0x15   :  { %p150_p9 = pnand %p149_p8, %p143_p5 }
  0x17   :  { %153 = shalt.err (!%p150_p9)
}
  0x18   :  { %41 = dma.hbm_to_vmem [thread:$0]  %s210_s1, 256, %s36_s17, [#allocation7], %s181_s12, %s181_s12, %s182_s13  }
  0x19   :  { %174 = dma.done.wait [#allocation4], 256  }
  0x1a   :  { %175 = vsyncadd [#allocation4], 4294967040 }
  0x1b   :  { %176 = dma.done.wait [#allocation7], 256  }
  0x1c   :  { %177 = vsyncadd [#allocation7], 4294967040  ;;  %v57_v0 = vld [vmem:[#allocation6] sm:$0xff]  ;;  %v58_v1 = vld [vmem:[#allocation6 + $0x8] sm:$0xff]  ;;  %s184_s0 = smov [#allocation8]  }
  0x1d   :  { %v59_v2 = vld [vmem:[#allocation3] sm:$0xff]  ;;  %v60_v3 = vld [vmem:[#allocation3 + $0x8] sm:$0xff]  ;;  %v65_v5 = vmul.f32 9.0, %v57_v0  ;;  %v66_v6 = vmul.f32 9.0, %v58_v1  ;;  %s97_s1 = sshll.u32 %s184_s0, 4  ;;  %s98_s1 = int_to_ptr.vmem [resolvable:$true] %s97_s1 }
  0x1e   :  { %v61_v4 = vsub.f32 %v57_v0, %v59_v2  ;;  %v62_v7 = vsub.f32 %v58_v1, %v60_v3  ;;  %s154_s22 = scalar_lea.vmem %s98_s1, 128  ;;  %p159_p11 = scmp.lt.s32.totalorder %s98_s1, %s98_s1 }
  0x1f   :  { %v67_v9 = vadd.f32 1.0, %v65_v5  ;;  %v68_v10 = vadd.f32 1.0, %v66_v6  ;;  %p155_p10 = scmp.ne.s32.totalorder %s98_s1, %s154_s22  ;;  %p160_p12 = scmp.lt.s32.totalorder %s154_s22, %s154_s22 }
  0x20   :  { %v63_v8 = vmul.f32 %v61_v4, %v61_v4  ;;  %v64_v11 = vmul.f32 %v62_v7, %v62_v7 }
  0x21   :  { %p161_p13 = por %p160_p12, %p159_p11 }
  0x22   :  { %v69_v12 = vmul.f32 %v67_v9, %v63_v8  ;;  %v70_v13 = vmul.f32 %v68_v10, %v64_v11 }
  0x23   :  { %p162_p0 = pnand %p161_p13, %p155_p10 }
  0x24   :  { %v72_v14 = vadd.f32 %v70_v13, %v69_v12 }
  0x26   :  { %79 = vadd.xlane.f32.xlu0 %v72_v14 }
  0xaf   :  { %v80_v15 = vpop.xlane.xlu0 %79 }
  0xb0   :  { %v81_v16 = vrot.slane %v80_v15, 4 }
  0xb2   :  { %v82_v17 = vadd.f32 %v81_v16, %v80_v15 }
  0xb4   :  { %v83_v18 = vrot.slane %v82_v17, 2 }
  0xb6   :  { %v84_v19 = vadd.f32 %v83_v18, %v82_v17 }
  0xb8   :  { %v85_v20 = vrot.slane %v84_v19, 1 }
  0xba   :  { %v86_v21 = vadd.f32 %v85_v20, %v84_v19 }
  0xbc   :  { %107 = vpush %v86_v21 }
  0xed   :  { %s108_s21 = spop %107 }
  0xee   :  { %v88_v22 = vstv %s108_s21 }
  0xef   :  { %90 = vst [vmem:[#allocation8] sm:$0xff] %v88_v22 }
  0xf0   :  { %165 = shalt.err (!%p162_p0)
}
  0xf1   :  { %100 = dma.vmem_to_hbm [thread:$0]  %s98_s1, 128, %s211_s2, [#allocation5]  }
  0xf2   :  { %178 = dma.done.wait [#allocation5], 128  }
  0xf3   :  { %179 = vsyncadd [#allocation5], 4294967168 }
  0xf4   :  { %104 = vsyncpa [#allocation4], 1 }
  0xf5   :  { %105 = vsyncpa [#allocation7], 1 }
  0xf6   :  { %106 = vsyncpa [#allocation5], 1 }

</bundles_post_ra>
